<compile_context>
chip_gen: v5e
topology: v5e:2x2
jax: 0.10.0
libtpu: 0.0.40
codegen_flags: <defaults>
</compile_context>

<pallas_src>
import functools

import jax
import jax.numpy as jnp
from jax import lax
from jax.experimental import pallas as pl
from jax.experimental.pallas import tpu as pltpu


def _sge_kernel(x_ref, sge_w_ref, sge_b_ref, conv_w_ref, conv_b_ref, o_ref, *,
                groups, hw_true):
    # x_ref:      (Bt, C, HWp)   current batch block, spatial (padded) on the lane axis
    # sge_w_ref:  (G, 1)         per-group scale
    # sge_b_ref:  (G, 1)         per-group shift
    # conv_w_ref: (Oup, C)       1x1 conv weight
    # conv_b_ref: (Oup, 1)       1x1 conv bias
    # o_ref:      (Bt, Oup, HWp)
    bt, c, hwp = x_ref.shape
    cg = c // groups
    inv_hw = 1.0 / hw_true

    # Group-membership matrices built on-chip once per grid step (iota + compare,
    # no HBM traffic, no vector integer division).
    g_row = lax.broadcasted_iota(jnp.int32, (groups, c), 0)
    c_col = lax.broadcasted_iota(jnp.int32, (groups, c), 1)
    lo = g_row * cg
    gmat = jnp.logical_and(c_col >= lo, c_col < lo + cg).astype(jnp.float32)      # (G, C)

    c_row = lax.broadcasted_iota(jnp.int32, (c, groups), 0)
    g_col = lax.broadcasted_iota(jnp.int32, (c, groups), 1)
    lo_t = g_col * cg
    gmat_t = jnp.logical_and(c_row >= lo_t, c_row < lo_t + cg).astype(jnp.float32)  # (C, G)

    sge_w = sge_w_ref[...]     # (G, 1)
    sge_b = sge_b_ref[...]     # (G, 1)
    conv_w = conv_w_ref[...]   # (Oup, C)
    conv_b = conv_b_ref[...]   # (Oup, 1)

    # Lane mask only needed when HW was padded up to a multiple of 128.
    if hwp != hw_true:
        lane_mask = lax.broadcasted_iota(jnp.int32, (groups, hwp), 1) < hw_true
    else:
        lane_mask = None

    def body(i, carry):
        x_b = x_ref[i].astype(jnp.float32)                          # (C, HWp)

        # Squeeze: per-channel spatial mean.  Padded lanes are zero, so an explicit
        # sum divided by the TRUE HW gives the exact adaptive_avg_pool2d result.
        pooled = jnp.sum(x_b, axis=-1, keepdims=True) * inv_hw      # (C, 1)

        # Per-group sum of x * pooled over that group's channels, expressed as a
        # lane-dense matmul (no sublane reshapes of the big slab).
        t = jnp.dot(gmat, x_b * pooled,
                    preferred_element_type=jnp.float32)             # (G, HWp)

        # Per-(batch, group) normalization over the true spatial positions.
        # torch.std is the unbiased estimator (divide by HW - 1); eps added to std.
        mean = jnp.sum(t, axis=-1, keepdims=True) * inv_hw          # (G, 1)
        tc = t - mean
        if lane_mask is not None:
            tc = jnp.where(lane_mask, tc, 0.0)                      # keep padded lanes out
        var = jnp.sum(tc * tc, axis=-1, keepdims=True) * (1.0 / (hw_true - 1))
        std_eps = jnp.sqrt(var) + 1e-5                              # (G, 1)
        # EUP reciprocal (approx) + one Newton step -> exact-to-f32, off the VPU ALUs.
        inv_std = pl.reciprocal(std_eps, approx=True)
        inv_std = inv_std * (2.0 - std_eps * inv_std)

        # Learnable per-group affine + sigmoid gate.
        gate = jax.nn.sigmoid(tc * inv_std * sge_w + sge_b)         # (G, HWp)

        # Broadcast the per-group gate back to channels with a tiny K=G matmul
        # (stays lane dense; only a per-item (C, HWp) temporary).
        gate_c = jnp.dot(gmat_t, gate,
                         preferred_element_type=jnp.float32)        # (C, HWp)
        xg = x_b * gate_c

        # Pointwise (1x1) conv: out[o, s] = W[o, :] @ xg[:, s] + bias[o].
        out = jnp.dot(conv_w, xg,
                      preferred_element_type=jnp.float32) + conv_b  # (Oup, HWp)
        o_ref[i] = out.astype(o_ref.dtype)
        return carry

    lax.fori_loop(0, bt, body, 0)


def _hardware_vmem_bytes():
    """Physical per-core VMEM (64 MiB on v7x, 128 MiB on v5e/v6e); safe fallback."""
    try:
        cap = int(pltpu.get_tpu_info().vmem_capacity_bytes)
        if cap > 0:
            return cap
    except Exception:
        pass
    return 64 << 20   # conservative: valid on every generation


def _plan_blocks(batch, c, oup, groups, hwp, io_item_bytes, block_b=None):
    """Pick block_b (divisor of batch) and an explicit, generation-aware VMEM limit.

    In-kernel f32 temporaries are per-batch-item (the kernel loops over items), so
    they do not scale with block_b; only the double-buffered I/O blocks do.
    """
    cap = _hardware_vmem_bytes()
    usable = max(cap - (8 << 20), 16 << 20)            # leave DMA/scratch headroom

    # Per-item in-kernel f32 temporaries (x_b, xn, gate_c, xg, out, stats, gmats) + slack.
    temp_bytes = (4 * c + oup + 6 * groups) * hwp * 4 + 2 * groups * c * 4 + (2 << 20)

    if block_b is None:
        io_budget = max((usable - temp_bytes) // 2, io_item_bytes)  # per-step single-buffer cap
        # Keep >= 2 grid steps whenever batch >= 2 so the "parallel" axis can be
        # sharded across both v7x TensorCores (harmless on 1-TC chips).
        max_items = batch if batch < 2 else batch // 2
        block_b = 1
        for d in range(1, batch + 1):
            if batch % d == 0 and d <= max_items and d * io_item_bytes <= io_budget:
                block_b = d

    vmem_limit = 2 * block_b * io_item_bytes + temp_bytes + (4 << 20)
    vmem_limit = int(min(max(vmem_limit, 32 << 20), usable))
    return block_b, vmem_limit


def spatial_group_enhance_pallas(x, sge_weight, sge_bias, conv_weight, conv_bias,
                                 *, groups=8, block_b=None):
    """Forward pass of SpatialGroupEnhance.

    x:           (B, C, H, W)        float32 or bfloat16
    sge_weight:  (1, groups, 1, 1)   per-group scale (PyTorch parameter layout)
    sge_bias:    (1, groups, 1, 1)   per-group shift
    conv_weight: (Oup, C, 1, 1)      1x1 conv weight (PyTorch layout)
    conv_bias:   (Oup,)              1x1 conv bias
    """
    B, C, H, W = x.shape
    assert C % groups == 0, "channels must be divisible by groups"
    Oup = conv_weight.shape[0]
    HW = H * W
    HWp = ((HW + 127) // 128) * 128                    # lane-dense last dim

    x3 = x.reshape(B, C, HW)
    if HWp != HW:
        x3 = jnp.pad(x3, ((0, 0), (0, 0), (0, HWp - HW)))

    sge_w2 = sge_weight.reshape(groups, 1).astype(jnp.float32)
    sge_b2 = sge_bias.reshape(groups, 1).astype(jnp.float32)
    conv_w2 = conv_weight.reshape(Oup, C).astype(jnp.float32)
    conv_b2 = conv_bias.reshape(Oup, 1).astype(jnp.float32)

    itemsize = jnp.dtype(x.dtype).itemsize             # bf16-aware I/O sizing
    io_item_bytes = (C + Oup) * HWp * itemsize
    block_b, vmem_limit = _plan_blocks(B, C, Oup, groups, HWp, io_item_bytes,
                                       block_b=block_b)
    assert B % block_b == 0
    grid_b = B // block_b

    kernel = functools.partial(_sge_kernel, groups=groups, hw_true=HW)
    out = pl.pallas_call(
        kernel,
        out_shape=jax.ShapeDtypeStruct((B, Oup, HWp), x.dtype),
        grid_spec=pltpu.PrefetchScalarGridSpec(
            num_scalar_prefetch=0,
            grid=(grid_b,),
            in_specs=[
                pl.BlockSpec((block_b, C, HWp), lambda b: (b, 0, 0)),
                pl.BlockSpec((groups, 1), lambda b: (0, 0)),
                pl.BlockSpec((groups, 1), lambda b: (0, 0)),
                pl.BlockSpec((Oup, C), lambda b: (0, 0)),
                pl.BlockSpec((Oup, 1), lambda b: (0, 0)),
            ],
            out_specs=pl.BlockSpec((block_b, Oup, HWp), lambda b: (b, 0, 0)),
        ),
        compiler_params=pltpu.CompilerParams(
            dimension_semantics=("parallel",),
            vmem_limit_bytes=vmem_limit,
        ),
    )(x3, sge_w2, sge_b2, conv_w2, conv_b2)

    if HWp != HW:
        out = out[:, :, :HW]
    return out.reshape(B, Oup, H, W)


def spatial_group_enhance_ref(x, sge_weight, sge_bias, conv_weight, conv_bias,
                              *, groups=8):
    """Pure-JAX reference mirroring the PyTorch forward."""
    B, C, H, W = x.shape
    cg = C // groups
    xg = x.reshape(B * groups, cg, H, W)
    pooled = jnp.mean(xg, axis=(2, 3), keepdims=True)            # (B*G, cg, 1, 1)
    xn = jnp.sum(xg * pooled, axis=1, keepdims=True)             # (B*G, 1, H, W)
    t = xn.reshape(B * groups, -1)
    t = t - jnp.mean(t, axis=1, keepdims=True)
    std = jnp.std(t, axis=1, keepdims=True, ddof=1) + 1e-5       # torch.std is unbiased
    t = t / std
    t = t.reshape(B, groups, H, W)
    t = t * sge_weight + sge_bias
    t = t.reshape(B * groups, 1, H, W)
    xs = (xg * jax.nn.sigmoid(t)).reshape(B, C, H, W)
    out = jnp.einsum('oc,bchw->bohw', conv_weight.reshape(conv_weight.shape[0], C), xs)
    return out + conv_bias.reshape(1, -1, 1, 1)


if __name__ == "__main__":
    def run_case(B, C, H, W, groups, Oup):
        key = jax.random.PRNGKey(0)
        kx, kw, kb, kcw, kcb = jax.random.split(key, 5)
        x = jax.random.normal(kx, (B, C, H, W), dtype=jnp.float32)
        # The PyTorch module initializes weight/bias to zero (gate == 0.5 exactly);
        # use small random values so the group-norm + affine path is actually exercised.
        sge_weight = jax.random.normal(kw, (1, groups, 1, 1), dtype=jnp.float32)
        sge_bias = jax.random.normal(kb, (1, groups, 1, 1), dtype=jnp.float32) * 0.1
        conv_weight = jax.random.normal(kcw, (Oup, C, 1, 1), dtype=jnp.float32) * 0.1
        conv_bias = jax.random.normal(kcb, (Oup,), dtype=jnp.float32) * 0.1

        out = spatial_group_enhance_pallas(x, sge_weight, sge_bias, conv_weight,
                                           conv_bias, groups=groups)
        out = jax.block_until_ready(out)
        ref = spatial_group_enhance_ref(x, sge_weight, sge_bias, conv_weight,
                                        conv_bias, groups=groups)
        assert out.shape == ref.shape
        err = float(jnp.max(jnp.abs(out - ref)))
        assert jnp.allclose(out, ref, atol=2e-3, rtol=2e-3), (
            f"mismatch vs reference, max abs err={err}")

    # Lane-dense case: HW = 256 (already a multiple of 128).
    run_case(B=2, C=32, H=16, W=16, groups=8, Oup=32)
    # Padded case: HW = 100 -> padded to 128; exercises the masked-statistics path.
    run_case(B=2, C=32, H=10, W=10, groups=8, Oup=16)

    print("KERNEL_OK")
</pallas_src>

<mosaic_0001>
module attributes {stable_mosaic.version = 11 : i64} {
  func.func @_sge_kernel(%arg0: i32, %arg1: memref<1x32x256xf32, #tpu.memory_space<vmem>>, %arg2: memref<8x1xf32, #tpu.memory_space<vmem>>, %arg3: memref<8x1xf32, #tpu.memory_space<vmem>>, %arg4: memref<32x32xf32, #tpu.memory_space<vmem>>, %arg5: memref<32x1xf32, #tpu.memory_space<vmem>>, %arg6: memref<1x32x256xf32, #tpu.memory_space<vmem>>) attributes {dimension_semantics = [#tpu.dimension_semantics<parallel>], iteration_bounds = array<i64: 2>, scalar_prefetch = 0 : i64, scratch_operands = 0 : i64, tpu.core_type = #tpu.core_type<tc>, window_params = [{transform_indices = @transform_0, window_bounds = array<i64: 1, 32, 256>}, {pipeline_mode = #tpu.pipeline_mode<synchronous>, transform_indices = @transform_1, window_bounds = array<i64: 8, 1>}, {pipeline_mode = #tpu.pipeline_mode<synchronous>, transform_indices = @transform_2, window_bounds = array<i64: 8, 1>}, {pipeline_mode = #tpu.pipeline_mode<synchronous>, transform_indices = @transform_3, window_bounds = array<i64: 32, 32>}, {pipeline_mode = #tpu.pipeline_mode<synchronous>, transform_indices = @transform_4, window_bounds = array<i64: 32, 1>}, {transform_indices = @transform_5, window_bounds = array<i64: 1, 32, 256>}]} {
    %0 = tpu.iota {dimensions = array<i32: 0>} : vector<8x32xi32>
    %1 = tpu.iota {dimensions = array<i32: 1>} : vector<8x32xi32>
    %c4_i32 = arith.constant 4 : i32
    %2 = vector.broadcast %c4_i32 : i32 to vector<8x32xi32>
    %3 = arith.muli %0, %2 : vector<8x32xi32>
    %4 = arith.cmpi sge, %1, %3 : vector<8x32xi32>
    %c4_i32_0 = arith.constant 4 : i32
    %5 = vector.broadcast %c4_i32_0 : i32 to vector<8x32xi32>
    %6 = arith.addi %3, %5 : vector<8x32xi32>
    %7 = arith.cmpi slt, %1, %6 : vector<8x32xi32>
    %8 = arith.andi %4, %7 : vector<8x32xi1>
    %9 = arith.extui %8 : vector<8x32xi1> to vector<8x32xi32>
    %10 = arith.sitofp %9 : vector<8x32xi32> to vector<8x32xf32>
    %11 = tpu.iota {dimensions = array<i32: 0>} : vector<32x8xi32>
    %12 = tpu.iota {dimensions = array<i32: 1>} : vector<32x8xi32>
    %c4_i32_1 = arith.constant 4 : i32
    %13 = vector.broadcast %c4_i32_1 : i32 to vector<32x8xi32>
    %14 = arith.muli %12, %13 : vector<32x8xi32>
    %15 = arith.cmpi sge, %11, %14 : vector<32x8xi32>
    %c4_i32_2 = arith.constant 4 : i32
    %16 = vector.broadcast %c4_i32_2 : i32 to vector<32x8xi32>
    %17 = arith.addi %14, %16 : vector<32x8xi32>
    %18 = arith.cmpi slt, %11, %17 : vector<32x8xi32>
    %19 = arith.andi %15, %18 : vector<32x8xi1>
    %20 = arith.extui %19 : vector<32x8xi1> to vector<32x8xi32>
    %21 = arith.sitofp %20 : vector<32x8xi32> to vector<32x8xf32>
    %c0 = arith.constant 0 : index
    %c0_3 = arith.constant 0 : index
    %22 = vector.load %arg2[%c0, %c0_3] : memref<8x1xf32, #tpu.memory_space<vmem>>, vector<8x1xf32>
    %c0_4 = arith.constant 0 : index
    %c0_5 = arith.constant 0 : index
    %23 = vector.load %arg3[%c0_4, %c0_5] : memref<8x1xf32, #tpu.memory_space<vmem>>, vector<8x1xf32>
    %c0_6 = arith.constant 0 : index
    %c0_7 = arith.constant 0 : index
    %24 = vector.load %arg4[%c0_6, %c0_7] : memref<32x32xf32, #tpu.memory_space<vmem>>, vector<32x32xf32>
    %c0_8 = arith.constant 0 : index
    %c0_9 = arith.constant 0 : index
    %25 = vector.load %arg5[%c0_8, %c0_9] : memref<32x1xf32, #tpu.memory_space<vmem>>, vector<32x1xf32>
    %c0_i32 = arith.constant 0 : i32
    %26 = arith.index_cast %c0_i32 : i32 to index
    %c0_10 = arith.constant 0 : index
    %c0_11 = arith.constant 0 : index
    %27 = vector.load %arg1[%26, %c0_10, %c0_11] : memref<1x32x256xf32, #tpu.memory_space<vmem>>, vector<1x32x256xf32>
    %28 = vector.shape_cast %27 : vector<1x32x256xf32> to vector<32x256xf32>
    %cst = arith.constant dense<0.000000e+00> : vector<32xf32>
    %29 = vector.multi_reduction <add>, %28, %cst [1] : vector<32x256xf32> to vector<32xf32>
    %30 = vector.shape_cast %29 : vector<32xf32> to vector<32x1xf32>
    %cst_12 = arith.constant 3.906250e-03 : f32
    %31 = vector.broadcast %cst_12 : f32 to vector<32x1xf32>
    %32 = arith.mulf %30, %31 : vector<32x1xf32>
    %33 = vector.broadcast %32 : vector<32x1xf32> to vector<32x256xf32>
    %34 = arith.mulf %28, %33 : vector<32x256xf32>
    %cst_13 = arith.constant dense<0.000000e+00> : vector<8x256xf32>
    %35 = tpu.matmul %10, %34, %cst_13 {dimension_numbers = #tpu.dot_dimension_numbers<[1], [0], [0], [1], [0, 0, 1, 1], [], []>} : vector<8x32xf32>, vector<32x256xf32>, vector<8x256xf32> -> vector<8x256xf32>
    %cst_14 = arith.constant dense<0.000000e+00> : vector<8xf32>
    %36 = vector.multi_reduction <add>, %35, %cst_14 [1] : vector<8x256xf32> to vector<8xf32>
    %37 = vector.shape_cast %36 : vector<8xf32> to vector<8x1xf32>
    %cst_15 = arith.constant 3.906250e-03 : f32
    %38 = vector.broadcast %cst_15 : f32 to vector<8x1xf32>
    %39 = arith.mulf %37, %38 : vector<8x1xf32>
    %40 = vector.broadcast %39 : vector<8x1xf32> to vector<8x256xf32>
    %41 = arith.subf %35, %40 : vector<8x256xf32>
    %42 = arith.mulf %41, %41 : vector<8x256xf32>
    %cst_16 = arith.constant dense<0.000000e+00> : vector<8xf32>
    %43 = vector.multi_reduction <add>, %42, %cst_16 [1] : vector<8x256xf32> to vector<8xf32>
    %44 = vector.shape_cast %43 : vector<8xf32> to vector<8x1xf32>
    %cst_17 = arith.constant 0.00392156886 : f32
    %45 = vector.broadcast %cst_17 : f32 to vector<8x1xf32>
    %46 = arith.mulf %44, %45 : vector<8x1xf32>
    %47 = math.sqrt %46 : vector<8x1xf32>
    %cst_18 = arith.constant 9.99999974E-6 : f32
    %48 = vector.broadcast %cst_18 : f32 to vector<8x1xf32>
    %49 = arith.addf %47, %48 : vector<8x1xf32>
    %50 = tpu.reciprocal %49 {approx = true} : vector<8x1xf32> -> vector<8x1xf32>
    %51 = arith.mulf %49, %50 : vector<8x1xf32>
    %cst_19 = arith.constant 2.000000e+00 : f32
    %52 = vector.broadcast %cst_19 : f32 to vector<8x1xf32>
    %53 = arith.subf %52, %51 : vector<8x1xf32>
    %54 = arith.mulf %50, %53 : vector<8x1xf32>
    %55 = vector.broadcast %54 : vector<8x1xf32> to vector<8x256xf32>
    %56 = arith.mulf %41, %55 : vector<8x256xf32>
    %57 = vector.broadcast %22 : vector<8x1xf32> to vector<8x256xf32>
    %58 = arith.mulf %56, %57 : vector<8x256xf32>
    %59 = vector.broadcast %23 : vector<8x1xf32> to vector<8x256xf32>
    %60 = arith.addf %58, %59 : vector<8x256xf32>
    %61 = arith.negf %60 : vector<8x256xf32>
    %62 = math.exp %61 : vector<8x256xf32>
    %cst_20 = arith.constant 1.000000e+00 : f32
    %63 = vector.broadcast %cst_20 : f32 to vector<8x256xf32>
    %64 = arith.addf %63, %62 : vector<8x256xf32>
    %65 = arith.divf %63, %64 : vector<8x256xf32>
    %cst_21 = arith.constant dense<0.000000e+00> : vector<32x256xf32>
    %66 = tpu.matmul %21, %65, %cst_21 {dimension_numbers = #tpu.dot_dimension_numbers<[1], [0], [0], [1], [0, 0, 1, 1], [], []>} : vector<32x8xf32>, vector<8x256xf32>, vector<32x256xf32> -> vector<32x256xf32>
    %67 = arith.mulf %28, %66 : vector<32x256xf32>
    %cst_22 = arith.constant dense<0.000000e+00> : vector<32x256xf32>
    %68 = tpu.matmul %24, %67, %cst_22 {dimension_numbers = #tpu.dot_dimension_numbers<[1], [0], [0], [1], [0, 0, 1, 1], [], []>} : vector<32x32xf32>, vector<32x256xf32>, vector<32x256xf32> -> vector<32x256xf32>
    %69 = vector.broadcast %25 : vector<32x1xf32> to vector<32x256xf32>
    %70 = arith.addf %68, %69 : vector<32x256xf32>
    %71 = arith.index_cast %c0_i32 : i32 to index
    %c0_23 = arith.constant 0 : index
    %c0_24 = arith.constant 0 : index
    %72 = vector.load %arg6[%71, %c0_23, %c0_24] : memref<1x32x256xf32, #tpu.memory_space<vmem>>, vector<1x32x256xf32>
    %73 = vector.shape_cast %72 : vector<1x32x256xf32> to vector<32x256xf32>
    %74 = vector.shape_cast %70 : vector<32x256xf32> to vector<1x32x256xf32>
    tpu.vector_store %arg6[%71, %c0_23, %c0_24], %74 {strides = array<i32>} : memref<1x32x256xf32, #tpu.memory_space<vmem>>, vector<1x32x256xf32>,
    %c1_i32 = arith.constant 1 : i32
    return
  }
  func.func @transform_0(%arg0: i32) -> (i32, i32, i32) {
    %c0_i32 = arith.constant 0 : i32
    %c0_i32_0 = arith.constant 0 : i32
    %c0_i32_1 = arith.constant 0 : i32
    return %arg0, %c0_i32, %c0_i32_0 : i32, i32, i32
  }
  func.func @transform_1(%arg0: i32) -> (i32, i32) {
    %c0_i32 = arith.constant 0 : i32
    %c0_i32_0 = arith.constant 0 : i32
    %c0_i32_1 = arith.constant 0 : i32
    return %c0_i32, %c0_i32_0 : i32, i32
  }
  func.func @transform_2(%arg0: i32) -> (i32, i32) {
    %c0_i32 = arith.constant 0 : i32
    %c0_i32_0 = arith.constant 0 : i32
    %c0_i32_1 = arith.constant 0 : i32
    return %c0_i32, %c0_i32_0 : i32, i32
  }
  func.func @transform_3(%arg0: i32) -> (i32, i32) {
    %c0_i32 = arith.constant 0 : i32
    %c0_i32_0 = arith.constant 0 : i32
    %c0_i32_1 = arith.constant 0 : i32
    return %c0_i32, %c0_i32_0 : i32, i32
  }
  func.func @transform_4(%arg0: i32) -> (i32, i32) {
    %c0_i32 = arith.constant 0 : i32
    %c0_i32_0 = arith.constant 0 : i32
    %c0_i32_1 = arith.constant 0 : i32
    return %c0_i32, %c0_i32_0 : i32, i32
  }
  func.func @transform_5(%arg0: i32) -> (i32, i32, i32) {
    %c0_i32 = arith.constant 0 : i32
    %c0_i32_0 = arith.constant 0 : i32
    %c0_i32_1 = arith.constant 0 : i32
    return %arg0, %c0_i32, %c0_i32_0 : i32, i32, i32
  }
}

</mosaic_0001>

<bundles_post_ra>
// kernel: tpu_custom_call.1
= control target key start
LH: loop header
LB: loop body
LE: loop exit
PB: predicated region body
PF: predicated region fallthrough
CT: control target
= control target key end

     0   :  { %10 = vsyncpa [#allocation3], 0  ;;  %s1195_s0 = inlined_call_operand.hbm [shape: f32[2,32,256], index: 0, kind: input, shape index: {}]   ;;  %s1196_s1 = inlined_call_operand.vmem [shape: f32[8,1], index: 1, kind: input, shape index: {}]   ;;  %s1197_s2 = inlined_call_operand.vmem [shape: f32[8,1], index: 2, kind: input, shape index: {}]   ;;  %s1198_s3 = inlined_call_operand.vmem [shape: f32[32,32], index: 3, kind: input, shape index: {}]   ;;  %s1199_s4 = inlined_call_operand.vmem [shape: f32[32,1], index: 4, kind: input, shape index: {}]   ;;  %s1200_s5 = inlined_call_operand.hbm [shape: f32[2,32,256], index: 5, kind: output, shape index: {}]  }
   0x1   :  { %12 = vsyncpa [#allocation3 + $0x1], 0 }
   0x2   :  { %13 = vsyncpa [#allocation4], 0 }
   0x3   :  { %15 = vsyncpa [#allocation4 + $0x1], 0  ;;  %s958_s18 = smov 0   ;;  %s960_s19 = smov 0  }
   0x4   :  { %s962_s20 = smov 0   ;;  %s964_s21 = smov 0  }
   0x5 LB: > { %s979_s22 = sadd.s32 4294967295, %s920_s21   ;;  %s716_s23 = sadd.s32 4294967294, %s920_s21   ;;  %s920_s21 = sphi %s964_s21, %s1210_s21   ;;  %s916_s20 = sphi %s962_s20, %s1209_s20   ;;  %s912_s19 = sphi %s960_s19, %s1208_s19   ;;  %s908_s18 = sphi %s958_s18, %s1207_s18  }
   0x6   : > { %s983_s24 = sadd.s32 1, %s920_s21   ;;  %s28_s25 = sadd.s32 1, %s916_s20 }
   0x7   : > { %s25_s26 = ssub.s32 %s920_s21, %s983_s24  ;;  %p35_p0 = scmp.ne.s32.totalorder %s916_s20, %s912_s19 }
   0x8   : > { %p26_p1 = scmp.eq.s32.totalorder %s25_s26, 0  ;;  %p36_p2 = scmp.eq.s32.totalorder %s920_s21, 0 }
   0x9   : > { %p41_p3 = scmp.ne.s32.totalorder %s912_s19, %s908_s18  ;;  %p42_p4 = scmp.eq.s32.totalorder %s979_s22, 0 }
   0xa   : > { %s995_s27 = scalar_select %p26_p1, %s916_s20, %s28_s25  }
   0xb   : > { %p997_p5 = por %p36_p2, %p35_p0  ;;  %p1001_p6 = por %p42_p4, %p41_p3 }
   0xc   : > { %p149_p7 = scmp.eq.s32.totalorder %s979_s22, 1  ;;  %p155_p8 = scmp.eq.s32.totalorder %s716_s23, 1 }
   0xd   : > { %p769_p10 = scmp.lt.s32.totalorder %s920_s21, 2  ;;  %s187_s7 = sand.u32 1, %s916_s20  }
   0xe   : > { %p1008_p11 = por %p149_p7, %p35_p0  ;;  %p1012_p12 = por %p155_p8, %p41_p3 }
   0xf   : > { %s755_s8 = sshll.u32 %s920_s21, 6  ;;  %s719_s9 = sshll.u32 %s187_s7, 6 }
  0x10   : > { %s196_s12 = scalar_lea.hbm %s1195_s0, %s755_s8  ;;  %s191_s14 = scalar_lea.vmem [#allocation2], %s719_s9 }
  0x11   : > { %s197_s13 = sshll.u32 %s196_s12, 4  ;;  %s199_s15 = sshll.u32 %s191_s14, 4  ;;  %s198_s13 = int_to_ptr.hbm [resolvable:$true] %s197_s13  ;;  %s200_s15 = int_to_ptr.vmem [resolvable:$true] %s199_s15 }
  0x12   : > { %p1023_p13 = pnand %p769_p10, %p997_p5  ;;  %p722_p0 = scmp.ge.s32.totalorder %s920_s21, 1 }
  0x13   : > { %p207_p1 = scmp.lt.s32.totalorder %s920_s21, 3  ;;  %s188_s17 = scalar_lea.sflag [#allocation3], %s187_s7 }
  0x14   : > { %s824_s23 = sshra.s32 %s198_s13, 4  ;;  %p828_p3 = pneg %p1023_p13  ;;  %s825_s23 = int_to_ptr.hbm [resolvable:$true] %s824_s23 }
  0x15   : > { %s826_s25 = scalar_lea.hbm %s825_s23, 64  ;;  %s831_s28 = scalar_lea.hbm %s1195_s0, 128 }
  0x16   : > { %p827_p2 = scmp.ne.s32.totalorder %s825_s23, %s826_s25  ;;  %p832_p5 = scmp.lt.s32.totalorder %s825_s23, %s1195_s0 }
  0x17   : > { %p833_p8 = scmp.lt.s32.totalorder %s831_s28, %s826_s25 }
  0x18   : > { %p829_p4 = pnand %p828_p3, %p827_p2 }
  0x19   : > { %p834_p10 = por %p833_p8, %p832_p5 }
  0x1a   : > { %p830_p7 = pneg %p829_p4 }
  0x1c   : > { %p835_p9 = pnand %p834_p10, %p830_p7 }
  0x1e   : > { %838 = shalt.err (!%p835_p9)
}
  0x1f   : > { %s922_s7 = smov 256   ;;  %s923_s11 = smov 16  }
  0x20   : > { %764 = dma.hbm_to_vmem [thread:$0]  (!%p1023_p13), %s198_s13, 1024, %s200_s15, %s188_s17, %s922_s7, %s922_s7, %s923_s11  }
  0x21   : > { %p208_p2 = pnand %p722_p0, %p207_p1 }
  0x22   : > { %s1044_s12 = sand.u32 (!%p208_p2), 1, %s912_s19  }
  0x23   : > { %211 = sbr.rel (%p208_p2) target bundleno = 940 (0x3ac), region = 40  ;;  %s723_s14 = sshll.u32 (!%p208_p2), %s1044_s12, 6 }
  0x24   : > { %s214_s23 = scalar_lea.sflag (!%p208_p2), [#allocation3], %s1044_s12  ;;  %s217_s25 = scalar_lea.vmem (!%p208_p2), [#allocation2], %s723_s14 }
  0x28   : > { %899 = dma.done.wait (%p1001_p6), %s214_s23, 1024  }
  0x29   : > { %901 = vsyncadd (%p1001_p6), %s214_s23, 4294966272  ;;  %v1054_v0 = vld [vmem:[%s217_s25 + $0x30] sm:$0xff]  ;;  %v1056_v1 = vld [vmem:[%s217_s25 + $0x38] sm:$0xff]  ;;  %v245_v12 = vlaneseq  ;;  %v924_v33 = vmov 0.0   ;;  %vm323_vm3 = vcmask 261120   ;;  %v925_v40 = vmov 0  }
  0x2a   : > { %v1058_v2 = vld [vmem:[%s217_s25 + $0x10] sm:$0xff]  ;;  %v308_v3 = vadd.f32 %v1056_v1, %v1054_v0  ;;  %v1062_v4 = vld [vmem:[%s217_s25 + $0x18] sm:$0xff]  ;;  %v1066_v6 = vld [vmem:[%s217_s25 + $0x20] sm:$0xff]  ;;  %810 = vset.pattern.permute.xlu1 %v925_v40  ;;  %809 = vset.pattern.permute.xlu0 %v925_v40  ;;  %s244_s8 = scalar_lea.vmem [#allocation5], %s723_s14  ;;  %s756_s28 = sshll.u32 %s979_s22, 6 }
  0x2b   : > { %v302_v5 = vadd.f32 %v1062_v4, %v1058_v2  ;;  %v1068_v7 = vld [vmem:[%s217_s25 + $0x28] sm:$0xff]  ;;  %v1070_v8 = vld [vmem:[%s217_s25] sm:$0xff]  ;;  %v1078_v13 = vshrl.u32 %v245_v12, 7  ;;  %v1083_v20 = vand.u32 127, %v245_v12  ;;  %811 = vset.pattern.permute.xlu2 %v925_v40  ;;  %v289_v41 = vld [vmem:[%s1199_s4 + $0x10] sm:$0xff]  ;;  %s639_s14 = scalar_lea.hbm %s1200_s5, %s756_s28  ;;  %s640_s7 = sshll.u32 %s244_s8, 4  ;;  %s641_s7 = int_to_ptr.vmem [resolvable:$true] %s640_s7 }
  0x2c   : > { %309 = vadd.xlane.f32.xlu0 %v308_v3  ;;  %v1072_v9 = vld [vmem:[%s217_s25 + $0x8] sm:$0xff]  ;;  %v305_v10 = vadd.f32 %v1068_v7, %v1066_v6  ;;  %v282_v38 = vld [vmem:[%s1197_s2] sm:$0xff]  ;;  %s642_s11 = sshll.u32 %s639_s14, 4  ;;  %s628_s22 = scalar_lea.sflag [#allocation4], %s1044_s12  ;;  %s643_s11 = int_to_ptr.hbm [resolvable:$true] %s642_s11 }
  0x2d   : > { %303 = vadd.xlane.f32.xlu1 %v302_v5  ;;  %v299_v11 = vadd.f32 %v1072_v9, %v1070_v8  ;;  %v249_v17 = vmul.u32 4, %v1078_v13  ;;  %v281_v39 = vld [vmem:[%s1196_s1] sm:$0xff]  ;;  %s868_s23 = sshra.s32 %s643_s11, 4  ;;  %s874_s15 = scalar_lea.hbm %s1200_s5, 128  ;;  %s869_s23 = int_to_ptr.hbm [resolvable:$true] %s868_s23 }
  0x2e   : > { %s870_s25 = scalar_lea.hbm %s869_s23, 64  ;;  %p875_p0 = scmp.lt.s32.totalorder %s869_s23, %s1200_s5 }
  0x2f   : > { %v251_v21 = vadd.s32 4, %v249_v17  ;;  %vm250_vm0 = vcmp.ge.s32.totalorder %v1083_v20, %v249_v17  ;;  %p871_p6 = scmp.ne.s32.totalorder %s869_s23, %s870_s25  ;;  %p876_p1 = scmp.lt.s32.totalorder %s874_s15, %s870_s25 }
  0x31   : > { %vm252_vm1 = vcmp.lt.s32.totalorder %v1083_v20, %v251_v21  ;;  %p872_p9 = pnand %p871_p6, %p1008_p11  ;;  %p877_p3 = por %p876_p1, %p875_p0 }
  0x32   : > { %vm253_vm2 = vmand %vm250_vm0, %vm252_vm1  ;;  %vm450_vm0 = vcmask 64512  }
  0x33   : > { %v725_v34 = vsel %vm253_vm2, 1.0, %v924_v33  ;;  %p873_p13 = pneg %p872_p9 }
  0x34   : > { %306 = vadd.xlane.f32.xlu0 %v305_v10 }
  0x35   : > { %300 = vadd.xlane.f32.xlu1 %v299_v11  ;;  %p878_p4 = pnand %p877_p3, %p873_p13 }
  0x48   : > { %400 = vperm.xlu0 %809, %v281_v39  }
  0x4e   : > { %407 = vperm.xlu1 %810, %v282_v38  }
  0x56   : > { %541 = vperm.xlu1 %810, %v289_v41   ;;  %v256_v41 = vadd.s32 8, %v1078_v13 }
  0x9f   : > { %v310_v14 = vpop.xlane.xlu0 %309 }
  0xa0   : > { %v314_v15 = vmul.f32 0.00390625, %v310_v14  ;;  %v304_v16 = vpop.xlane.xlu1 %303 }
  0xa1   : > { %v312_v22 = vmul.f32 0.00390625, %v304_v16 }
  0xa2   : > { %v321_v18 = vmul.f32 %v314_v15, %v1054_v0  ;;  %v322_v19 = vmul.f32 %v314_v15, %v1056_v1 }
  0xa3   : > { %v317_v29 = vmul.f32 %v312_v22, %v1058_v2  ;;  %v318_v30 = vmul.f32 %v312_v22, %v1062_v4 }
  0xa4   : > { %339 = vmatpush.msra.mxu0 %v321_v18  ;;  %359 = vmatpush.msra.mxu1 %v322_v19 }
  0xa7   : > { %v307_v23 = vpop.xlane.xlu0 %306 }
  0xa8   : > { %v313_v24 = vmul.f32 0.00390625, %v307_v23  ;;  %v301_v25 = vpop.xlane.xlu1 %300 }
  0xa9   : > { %v311_v26 = vmul.f32 0.00390625, %v301_v25 }
  0xaa   : > { %v319_v27 = vmul.f32 %v313_v24, %v1066_v6  ;;  %v320_v28 = vmul.f32 %v313_v24, %v1068_v7 }
  0xab   : > { %v315_v31 = vmul.f32 %v311_v26, %v1070_v8  ;;  %v316_v32 = vmul.f32 %v311_v26, %v1072_v9  ;;  %v259_v26 = vmul.u32 4, %v1083_v20 }
  0xac   : > { %340 = vmatpush.msra.mxu0 %v319_v27  ;;  %360 = vmatpush.msra.mxu1 %v320_v28 }
  0xad   : > { %v264_v27 = vadd.s32 4, %v259_v26  ;;  %vm260_vm6 = vcmp.ge.s32.totalorder %v1078_v13, %v259_v26  ;;  %vm261_vm2 = vcmp.ge.s32.totalorder %v256_v41, %v259_v26 }
  0xae   : > { %341 = vmatpush.msra.mxu0 %v317_v29  ;;  %361 = vmatpush.msra.mxu1 %v318_v30 }
  0xaf   : > { %vm265_vm7 = vcmp.lt.s32.totalorder %v1078_v13, %v264_v27 }
  0xb0   : > { %342 = vmatpush.msra.mxu0 %v315_v31  ;;  %362 = vmatpush.msra.mxu1 %v316_v32  ;;  %vm269_vm9 = vmand %vm260_vm6, %vm265_vm7 }
  0xb1   : > { %730 = vmatmul.msk.f32.vlgmr.msra.gmra.mxu0 %vm323_vm3, %v725_v34  ;;  %731 = vmatmul.msk.f32.vlgmr.msra.gmra.mxu1 %vm323_vm3, %v725_v34 }
  0xba   : > { %v401_v10 = vpop.permute.xlu0 %400 }
  0xc0   : > { %v408_v16 = vpop.permute.xlu1 %407 }
 0x12e   : > { %v344_v35 = vpop.f32.mrf.mxu0  ;;  %v364_v36 = vpop.f32.mrf.mxu1 }
 0x12f   : > { %v367_v37 = vadd.f32 %v364_v36, %v344_v35 }
 0x131   : > { %368 = vadd.xlane.f32.xlu2 %v367_v37 }
 0x1a4   : > { %v369_v42 = vpop.xlane.xlu2 %368 }
 0x1a5   : > { %v370_v43 = vmul.f32 0.00390625, %v369_v42 }
 0x1a7   : > { %v371_v44 = vsub.f32 %v344_v35, %v370_v43  ;;  %v372_v45 = vsub.f32 %v364_v36, %v370_v43 }
 0x1a9   : > { %v373_v46 = vmul.f32 %v371_v44, %v371_v44  ;;  %v374_v47 = vmul.f32 %v372_v45, %v372_v45 }
 0x1ab   : > { %v375_v48 = vadd.f32 %v374_v47, %v373_v46 }
 0x1ad   : > { %376 = vadd.xlane.f32.xlu2 %v375_v48 }
 0x220   : > { %v377_v49 = vpop.xlane.xlu2 %376 }
 0x221   : > { %v378_v50 = vmul.f32 0.003921569, %v377_v49 }
 0x223   : > { %812 = vrsqrt.f32 %v378_v50  ;;  %vm386_vm4 = vcmp.eq.f32.partialorder %v378_v50, inf  ;;  %v389_v58 = vand.u32 2147483648, %v378_v50  ;;  %vm388_vm5 = vcmp.eq.f32.partialorder %v378_v50, 0.0 }
 0x229   : > { %v813_v51 = vpop.eup %812 }
 0x22a   : > { %v380_v52 = vmul.f32 %v813_v51, %v378_v50 }
 0x22c   : > { %v381_v53 = vmul.f32 %v813_v51, %v380_v52  ;;  %v258_v52 = vadd.s32 24, %v1078_v13 }
 0x22e   : > { %v382_v54 = vmul.f32 0.5, %v381_v53 }
 0x230   : > { %v383_v55 = vsub.f32 1.5, %v382_v54 }
 0x232   : > { %v384_v56 = vmul.f32 %v813_v51, %v383_v55 }
 0x234   : > { %v385_v57 = vmul.f32 %v384_v56, %v378_v50 }
 0x236   : > { %v387_v59 = vsel %vm386_vm4, %v378_v50, %v385_v57  ;;  %vm266_vm4 = vcmp.lt.s32.totalorder %v256_v41, %v264_v27  ;;  %v257_v50 = vadd.s32 16, %v1078_v13 }
 0x237   : > { %v390_v60 = vsel %vm388_vm5, %v389_v58, %v387_v59  ;;  %vm270_vm5 = vmand %vm261_vm2, %vm266_vm4 }
 0x238   : > { %v391_v61 = vadd.f32 1e-05, %v390_v60  ;;  %v727_v51 = vsel %vm270_vm5, 1.0, %v924_v33  ;;  %vm262_vm6 = vcmp.ge.s32.totalorder %v257_v50, %v259_v26  ;;  %vm267_vm7 = vcmp.lt.s32.totalorder %v257_v50, %v264_v27 }
 0x23a   : > { %814 = vrcp.f32 %v391_v61 }
 0x240   : > { %v815_v62 = vpop.eup %814 }
 0x241   : > { %v393_v63 = vmul.f32 %v815_v62, %v391_v61 }
 0x243   : > { %v394_v3 = vsub.f32 2.0, %v393_v63 }
 0x245   : > { %v395_v5 = vmul.f32 %v815_v62, %v394_v3 }
 0x247   : > { %v396_v11 = vmul.f32 %v395_v5, %v371_v44  ;;  %v397_v12 = vmul.f32 %v395_v5, %v372_v45  ;;  %v726_v44 = vsel %vm269_vm9, 1.0, %v924_v33  ;;  %vm263_vm9 = vcmp.ge.s32.totalorder %v258_v52, %v259_v26 }
 0x249   : > { %v403_v14 = vmul.f32 %v401_v10, %v396_v11  ;;  %v404_v15 = vmul.f32 %v401_v10, %v397_v12 }
 0x24b   : > { %v410_v17 = vadd.f32 %v408_v16, %v403_v14  ;;  %v411_v18 = vadd.f32 %v408_v16, %v404_v15 }
 0x24d   : > { %v732_v19 = vmul.f32 -1.442695, %v410_v17  ;;  %v733_v21 = vmul.f32 -1.442695, %v411_v18 }
 0x24f   : > { %816 = vpow2.f32 %v732_v19 }
 0x250   : > { %818 = vpow2.f32 %v733_v21 }
 0x255   : > { %v817_v22 = vpop.eup %816 }
 0x256   : > { %v819_v23 = vpop.eup %818  ;;  %v418_v24 = vadd.f32 1.0, %v817_v22 }
 0x257   : > { %v419_v25 = vadd.f32 1.0, %v819_v23 }
 0x258   : > { %820 = vrcp.f32 %v418_v24  ;;  %v431_v34 = vand.u32 2147483648, %v418_v24  ;;  %v429_v37 = vand.u32 2147483647, %v418_v24  ;;  %vm425_vm11 = vweird.f32 %v418_v24 }
 0x259   : > { %822 = vrcp.f32 %v419_v25  ;;  %v446_v38 = vand.u32 2147483648, %v419_v25  ;;  %v444_v39 = vand.u32 2147483647, %v419_v25  ;;  %vm440_vm13 = vweird.f32 %v419_v25 }
 0x25a   : > { %v432_v42 = vor.u32 1.1754944e-38, %v431_v34  ;;  %vm430_vm14 = vcmp.eq.f32.partialorder %v429_v37, 8.507059e+37 }
 0x25b   : > { %v447_v46 = vor.u32 1.1754944e-38, %v446_v38  ;;  %vm445_vm1 = vcmp.eq.f32.partialorder %v444_v39, 8.507059e+37 }
 0x25e   : > { %v821_v28 = vpop.eup %820 }
 0x25f   : > { %v823_v29 = vpop.eup %822  ;;  %v421_v30 = vmul.f32 %v821_v28, %v418_v24  ;;  %vm426_vm8 = vweird.f32 %v821_v28  ;;  %v542_v24 = vpop.permute.xlu1 %541 }
 0x260   : > { %v436_v31 = vmul.f32 %v823_v29, %v419_v25  ;;  %vm441_vm10 = vweird.f32 %v823_v29  ;;  %vm427_vm12 = vmor %vm425_vm11, %vm426_vm8 }
 0x261   : > { %v422_v32 = vsub.f32 1.0, %v421_v30  ;;  %vm442_vm15 = vmor %vm440_vm13, %vm441_vm10  ;;  %vm268_vm10 = vcmp.lt.s32.totalorder %v258_v52, %v264_v27 }
 0x262   : > { %v437_v35 = vsub.f32 1.0, %v436_v31  ;;  %vm271_vm8 = vmand %vm262_vm6, %vm267_vm7 }
 0x263   : > { %v423_v36 = vmul.f32 %v821_v28, %v422_v32  ;;  %v728_v53 = vsel %vm271_vm8, 1.0, %v924_v33  ;;  %vm272_vm11 = vmand %vm263_vm9, %vm268_vm10 }
 0x264   : > { %v438_v20 = vmul.f32 %v823_v29, %v437_v35  ;;  %v729_v54 = vsel %vm272_vm11, 1.0, %v924_v33  ;;  %v287_v33 = vld [vmem:[%s1199_s4] sm:$0xff] }
 0x265   : > { %v424_v40 = vadd.f32 %v821_v28, %v423_v36  ;;  %531 = vperm.xlu2 %811, %v287_v33  }
 0x266   : > { %v439_v43 = vadd.f32 %v823_v29, %v438_v20 }
 0x267   : > { %v428_v45 = vsel %vm427_vm12, %v821_v28, %v424_v40 }
 0x268   : > { %v433_v47 = vsel %vm430_vm14, %v432_v42, %v428_v45  ;;  %v443_v48 = vsel %vm442_vm15, %v823_v29, %v439_v43 }
 0x269   : > { %478 = vmatpush.msra.mxu2 %v433_v47  ;;  %v448_v49 = vsel %vm445_vm1, %v447_v46, %v443_v48 }
 0x26a   : > { %507 = vmatpush.msra.mxu3 %v448_v49  ;;  %734 = vmatmul.msk.f32.vlgmr.msra.gmra.mxu2 %vm450_vm0, %v726_v44 }
 0x26b   : > { %738 = vmatmul.msk.f32.vlgmr.msra.gmra.mxu3 %vm450_vm0, %v726_v44 }
 0x272   : > { %735 = vmatmul.msk.f32.gmra.mxu2 %vm450_vm0, %v727_v51 }
 0x273   : > { %739 = vmatmul.msk.f32.gmra.mxu3 %vm450_vm0, %v727_v51 }
 0x27a   : > { %736 = vmatmul.msk.f32.gmra.mxu2 %vm450_vm0, %v728_v53 }
 0x27b   : > { %740 = vmatmul.msk.f32.gmra.mxu3 %vm450_vm0, %v728_v53 }
 0x282   : > { %737 = vmatmul.msk.f32.gmra.mxu2 %vm450_vm0, %v729_v54 }
 0x283   : > { %741 = vmatmul.msk.f32.gmra.mxu3 %vm450_vm0, %v729_v54 }
 0x2bf   : > { %v532_v12 = vpop.permute.xlu2 %531 }
 0x2ed   : > { %v480_v55 = vpop.f32.mrf.mxu2 }
 0x2ee   : > { %v509_v56 = vpop.f32.mrf.mxu3 }
 0x2f5   : > { %v483_v57 = vpop.f32.mrf.mxu2 }
 0x2f6   : > { %v512_v58 = vpop.f32.mrf.mxu3  ;;  %v523_v10 = vmul.f32 %v483_v57, %v1058_v2  ;;  %v284_v2 = vld [vmem:[%s1198_s3 + $0x8] sm:$0xff] }
 0x2f7   : > { %v524_v11 = vmul.f32 %v512_v58, %v1062_v4  ;;  %v290_v4 = vld [vmem:[%s1199_s4 + $0x18] sm:$0xff] }
 0x2fd   : > { %v486_v13 = vpop.f32.mrf.mxu2 }
 0x2fe   : > { %v515_v59 = vpop.f32.mrf.mxu3  ;;  %v525_v3 = vmul.f32 %v486_v13, %v1066_v6  ;;  %v522_v6 = vmul.f32 %v509_v56, %v1072_v9  ;;  %v286_v9 = vld [vmem:[%s1198_s3 + $0x18] sm:$0xff] }
 0x2ff   : > { %v526_v5 = vmul.f32 %v515_v59, %v1068_v7  ;;  %v288_v7 = vld [vmem:[%s1199_s4 + $0x8] sm:$0xff] }
 0x300   : > { %536 = vperm.xlu2 %811, %v288_v7  }
 0x305   : > { %v489_v60 = vpop.f32.mrf.mxu2 }
 0x306   : > { %v527_v61 = vmul.f32 %v489_v60, %v1054_v0  ;;  %v518_v62 = vpop.f32.mrf.mxu3  ;;  %v521_v0 = vmul.f32 %v480_v55, %v1070_v8  ;;  %v285_v8 = vld [vmem:[%s1198_s3 + $0x10] sm:$0xff] }
 0x307   : > { %v528_v63 = vmul.f32 %v518_v62, %v1056_v1  ;;  %v283_v1 = vld [vmem:[%s1198_s3] sm:$0xff] }
 0x308   : > { %573 = vmatpush.msrb.mxu0 %v527_v61  ;;  %546 = vperm.xlu2 %811, %v290_v4  }
 0x309   : > { %602 = vmatpush.msrb.mxu1 %v528_v63 }
 0x30a   : > { %574 = vmatpush.msrb.mxu0 %v525_v3 }
 0x30b   : > { %603 = vmatpush.msrb.mxu1 %v526_v5 }
 0x30c   : > { %575 = vmatpush.msrb.mxu0 %v523_v10 }
 0x30d   : > { %604 = vmatpush.msrb.mxu1 %v524_v11 }
 0x30e   : > { %576 = vmatpush.msrb.mxu0 %v521_v0 }
 0x30f   : > { %605 = vmatpush.msrb.mxu1 %v522_v6  ;;  %742 = vmatmul.msk.f32.vlgmr.msrb.gmra.mxu0 %vm323_vm3, %v283_v1 }
 0x310   : > { %746 = vmatmul.msk.f32.vlgmr.msrb.gmra.mxu1 %vm323_vm3, %v283_v1 }
 0x317   : > { %743 = vmatmul.msk.f32.gmra.mxu0 %vm323_vm3, %v284_v2 }
 0x318   : > { %747 = vmatmul.msk.f32.gmra.mxu1 %vm323_vm3, %v284_v2 }
 0x31f   : > { %744 = vmatmul.msk.f32.gmra.mxu0 %vm323_vm3, %v285_v8 }
 0x320   : > { %748 = vmatmul.msk.f32.gmra.mxu1 %vm323_vm3, %v285_v8 }
 0x327   : > { %745 = vmatmul.msk.f32.gmra.mxu0 %vm323_vm3, %v286_v9 }
 0x328   : > { %749 = vmatmul.msk.f32.gmra.mxu1 %vm323_vm3, %v286_v9 }
 0x35a   : > { %v537_v18 = vpop.permute.xlu2 %536 }
 0x362   : > { %v547_v29 = vpop.permute.xlu2 %546 }
 0x38c   : > { %v578_v14 = vpop.f32.mrf.mxu0 }
 0x38d   : > { %v579_v15 = vadd.f32 %v578_v14, %v532_v12  ;;  %v607_v16 = vpop.f32.mrf.mxu1 }
 0x38e   : > { %v608_v17 = vadd.f32 %v607_v16, %v532_v12 }
 0x38f   : > { %619 = vst [vmem:[%s244_s8] sm:$0xff] %v579_v15 }
 0x390   : > { %620 = vst [vmem:[%s244_s8 + $0x8] sm:$0xff] %v608_v17 }
 0x394   : > { %v581_v19 = vpop.f32.mrf.mxu0 }
 0x395   : > { %v582_v21 = vadd.f32 %v581_v19, %v537_v18  ;;  %v610_v22 = vpop.f32.mrf.mxu1 }
 0x396   : > { %v611_v23 = vadd.f32 %v610_v22, %v537_v18 }
 0x397   : > { %621 = vst [vmem:[%s244_s8 + $0x10] sm:$0xff] %v582_v21 }
 0x398   : > { %622 = vst [vmem:[%s244_s8 + $0x18] sm:$0xff] %v611_v23 }
 0x39c   : > { %v584_v25 = vpop.f32.mrf.mxu0 }
 0x39d   : > { %v585_v26 = vadd.f32 %v584_v25, %v542_v24  ;;  %v613_v27 = vpop.f32.mrf.mxu1 }
 0x39e   : > { %v614_v28 = vadd.f32 %v613_v27, %v542_v24 }
 0x39f   : > { %623 = vst [vmem:[%s244_s8 + $0x20] sm:$0xff] %v585_v26 }
 0x3a0   : > { %624 = vst [vmem:[%s244_s8 + $0x28] sm:$0xff] %v614_v28 }
 0x3a4   : > { %v587_v30 = vpop.f32.mrf.mxu0 }
 0x3a5   : > { %v588_v31 = vadd.f32 %v587_v30, %v547_v29  ;;  %v616_v32 = vpop.f32.mrf.mxu1 }
 0x3a6   : > { %v617_v34 = vadd.f32 %v616_v32, %v547_v29 }
 0x3a7   : > { %625 = vst [vmem:[%s244_s8 + $0x30] sm:$0xff] %v588_v31 }
 0x3a8   : > { %626 = vst [vmem:[%s244_s8 + $0x38] sm:$0xff] %v617_v34 }
 0x3a9   : > { %881 = shalt.err (!%p878_p4)
}
 0x3aa   : > { %s926_s12 = smov 256   ;;  %s927_s26 = smov 16  }
 0x3ab   : > { %759 = dma.vmem_to_hbm [thread:$0]  (%p1008_p11), %s641_s7, 1024, %s643_s11, %s628_s22, %s926_s12, %s926_s12, %s927_s26  }
 0x3ac PF: > { %s657_s8 = sand.u32 1, %s908_s18   ;;  %p1206_p7 = scmp.ge.s32.totalorder %s920_s21, 2 }
 0x3ad   : > { %s658_s28 = scalar_lea.sflag [#allocation4], %s657_s8 }
 0x3ae   : > { %p766_p5 = pnand %p1206_p7, %p1012_p12 }
 0x3b0   : > { %p767_p8 = pneg %p766_p5 }
 0x3b2   : > { %903 = dma.done.wait (%p767_p8), %s658_s28, 1024  }
 0x3b3   : > { %905 = vsyncadd (%p767_p8), %s658_s28, 4294966272  ;;  %p18_p10 = scmp.ge.s32.totalorder %s983_s24, 4   ;;  %s1207_s18 = smov %s912_s19 }
 0x3b4   : > { %s1208_s19 = smov %s916_s20  ;;  %s1209_s20 = smov %s995_s27 }
 0x3b5   : > { %s1210_s21 = smov %s983_s24  ;;  %20 = sbr.rel (!%p18_p10) target bundleno = 5 (0x5), region = 85 }
 0x3ba   :  { %664 = vsyncpa [#allocation3], 1 }
 0x3bb   :  { %666 = vsyncpa [#allocation3 + $0x1], 1 }
 0x3bc   :  { %667 = vsyncpa [#allocation4], 1 }
 0x3bd   :  { %669 = vsyncpa [#allocation4 + $0x1], 1 }

</bundles_post_ra>
